<compile_context>
chip_gen: v7x
topology: tpu7x:2x2x1
jax: 0.10.0
libtpu: 0.0.40
codegen_flags: <defaults>
</compile_context>

<pallas_src>
import jax
import jax.numpy as jnp
from jax.experimental import pallas as pl
from jax.experimental.pallas import tpu as pltpu

_LANE = 128


def _group_all_kernel(xyz_ref, feat_ref, out_ref):
    # xyz_ref : (3, TN)    feat_ref : (C, TN)    out_ref : (3 + C, TN)
    out_ref[0:3, :] = xyz_ref[...].astype(out_ref.dtype)
    out_ref[3:, :] = feat_ref[...].astype(out_ref.dtype)


def _copy_kernel(src_ref, out_ref):
    # src_ref / out_ref : (3, TN) — xyz-only path.
    out_ref[...] = src_ref[...].astype(out_ref.dtype)


def _round_up(x, m):
    return (x + m - 1) // m * m


def _pick_n_tile(n_pad, max_rows, itemsize, budget_bytes=2 << 20):
    """Largest lane tile (multiple of 128) dividing n_pad whose largest block
    stays under ~2 MiB, so all blocks x 2 buffers fit scoped VMEM on every
    chip (including v7x's 64 MiB physical VMEM)."""
    for tn in (2048, 1024, 512, 256, 128):
        if n_pad % tn == 0 and max_rows * tn * itemsize <= budget_bytes:
            return tn
    return _LANE


def _pad_lanes(x, n_pad):
    n = x.shape[-1]
    if n == n_pad:
        return x
    pad = [(0, 0)] * (x.ndim - 1) + [(0, n_pad - n)]
    return jnp.pad(x, pad)


def group_all(xyz, new_xyz=None, features=None, use_xyz=True):
    """Pallas equivalent of GroupAll.forward.

    xyz: (B, N, 3)
    new_xyz: ignored (signature parity with the PyTorch module)
    features: (B, C, N) or None
    Returns: (B, C+3, 1, N) if features is not None and use_xyz,
             (B, C, 1, N)   if features is not None and not use_xyz,
             (B, 3, 1, N)   if features is None.
    """
    del new_xyz  # ignored, exactly as in the PyTorch module
    B, N, three = xyz.shape
    assert three == 3

    # Pre-transpose xyz once in the wrapper: (B, N, 3) -> (B, 3, N).
    # Avoids a lane-sparse (N, 3) block and a per-tile in-kernel transpose.
    xyz_t = jnp.transpose(xyz, (0, 2, 1))

    if features is None:
        out_dtype = xyz.dtype
        itemsize = jnp.dtype(out_dtype).itemsize
        n_pad = _round_up(N, _LANE)
        xyz_p = _pad_lanes(xyz_t, n_pad)
        tn = _pick_n_tile(n_pad, 3, itemsize)
        vmem_limit = max(4 * 2 * 3 * tn * itemsize, 32 * 1024 * 1024)
        out = pl.pallas_call(
            _copy_kernel,
            out_shape=jax.ShapeDtypeStruct((B, 3, n_pad), out_dtype),
            grid=(B, n_pad // tn),
            in_specs=[pl.BlockSpec((None, 3, tn), lambda b, n: (b, 0, n))],
            out_specs=pl.BlockSpec((None, 3, tn), lambda b, n: (b, 0, n)),
            compiler_params=pltpu.CompilerParams(
                dimension_semantics=("parallel", "parallel"),
                vmem_limit_bytes=int(vmem_limit)),
        )(xyz_p)
        return out[:, :, None, :N]

    Bf, C, Nf = features.shape
    assert Bf == B and Nf == N

    if not use_xyz:
        # Pure layout change (unsqueeze), no compute — leave to XLA.
        return features[:, :, None, :]

    out_dtype = jnp.result_type(xyz.dtype, features.dtype)
    itemsize = jnp.dtype(out_dtype).itemsize
    n_pad = _round_up(N, _LANE)
    xyz_p = _pad_lanes(xyz_t, n_pad)
    feat_p = _pad_lanes(features, n_pad)

    tn = _pick_n_tile(n_pad, C + 3, itemsize)

    block_bytes = (3 * tn * jnp.dtype(xyz_p.dtype).itemsize
                   + C * tn * jnp.dtype(feat_p.dtype).itemsize
                   + (C + 3) * tn * itemsize)
    # 2x double-buffering, 2x headroom; never below the v6e/v7x default.
    vmem_limit = max(4 * block_bytes, 32 * 1024 * 1024)

    out = pl.pallas_call(
        _group_all_kernel,
        out_shape=jax.ShapeDtypeStruct((B, C + 3, n_pad), out_dtype),
        grid=(B, n_pad // tn),
        in_specs=[
            pl.BlockSpec((None, 3, tn), lambda b, n: (b, 0, n)),
            pl.BlockSpec((None, C, tn), lambda b, n: (b, 0, n)),
        ],
        out_specs=pl.BlockSpec((None, C + 3, tn), lambda b, n: (b, 0, n)),
        compiler_params=pltpu.CompilerParams(
            dimension_semantics=("parallel", "parallel"),
            vmem_limit_bytes=int(vmem_limit)),
    )(xyz_p, feat_p)
    return out[:, :, None, :N]


if __name__ == "__main__":
    key = jax.random.PRNGKey(0)
    B, N, C = 2, 16, 4
    k1, k2 = jax.random.split(key)

    xyz = jax.random.normal(k1, (B, N, 3), dtype=jnp.float32)
    features = jax.random.normal(k2, (B, C, N), dtype=jnp.float32)
    new_xyz = jnp.zeros((B, 1, 3), dtype=jnp.float32)  # ignored by GroupAll

    # Main path: use_xyz=True with features.
    out = jax.block_until_ready(group_all(xyz, new_xyz, features,
                                          use_xyz=True))

    grouped_xyz_ref = jnp.transpose(xyz, (0, 2, 1))[:, :, None, :]
    grouped_feat_ref = features[:, :, None, :]
    ref = jnp.concatenate([grouped_xyz_ref, grouped_feat_ref], axis=1)

    assert out.shape == (B, C + 3, 1, N), out.shape
    assert out.dtype == ref.dtype
    assert jnp.allclose(out, ref), "mismatch vs reference (use_xyz=True)"

    # xyz-only path.
    out_xyz = jax.block_until_ready(group_all(xyz, new_xyz, None))
    assert out_xyz.shape == (B, 3, 1, N)
    assert jnp.allclose(out_xyz, grouped_xyz_ref), "mismatch (features=None)"

    # use_xyz=False path (pure reshape).
    out_nf = jax.block_until_ready(group_all(xyz, new_xyz, features,
                                             use_xyz=False))
    assert out_nf.shape == (B, C, 1, N)
    assert jnp.allclose(out_nf, grouped_feat_ref), "mismatch (use_xyz=False)"

    print("KERNEL_OK")
</pallas_src>

<mosaic_0001>
module attributes {stable_mosaic.version = 11 : i64} {
  func.func @_group_all_kernel(%arg0: i32, %arg1: i32, %arg2: memref<1x3x128xf32, #tpu.memory_space<vmem>>, %arg3: memref<1x4x128xf32, #tpu.memory_space<vmem>>, %arg4: memref<1x7x128xf32, #tpu.memory_space<vmem>>) attributes {dimension_semantics = [#tpu.dimension_semantics<parallel>, #tpu.dimension_semantics<parallel>], iteration_bounds = array<i64: 2, 1>, scalar_prefetch = 0 : i64, scratch_operands = 0 : i64, tpu.core_type = #tpu.core_type<tc>, window_params = [{transform_indices = @transform_0, window_bounds = array<i64: 1, 3, 128>}, {transform_indices = @transform_1, window_bounds = array<i64: 1, 4, 128>}, {transform_indices = @transform_2, window_bounds = array<i64: 1, 7, 128>}]} {
    %c0 = arith.constant 0 : index
    %c0_0 = arith.constant 0 : index
    %c0_1 = arith.constant 0 : index
    %0 = vector.load %arg2[%c0, %c0_0, %c0_1] : memref<1x3x128xf32, #tpu.memory_space<vmem>>, vector<1x3x128xf32>
    %1 = vector.shape_cast %0 : vector<1x3x128xf32> to vector<3x128xf32>
    %c0_2 = arith.constant 0 : index
    %c0_3 = arith.constant 0 : index
    %c0_4 = arith.constant 0 : index
    %2 = vector.load %arg4[%c0_2, %c0_3, %c0_4] : memref<1x7x128xf32, #tpu.memory_space<vmem>>, vector<1x3x128xf32>
    %3 = vector.shape_cast %2 : vector<1x3x128xf32> to vector<3x128xf32>
    %4 = vector.shape_cast %1 : vector<3x128xf32> to vector<1x3x128xf32>
    tpu.vector_store %arg4[%c0_2, %c0_3, %c0_4], %4 {strides = array<i32>} : memref<1x7x128xf32, #tpu.memory_space<vmem>>, vector<1x3x128xf32>,
    %c0_5 = arith.constant 0 : index
    %c0_6 = arith.constant 0 : index
    %c0_7 = arith.constant 0 : index
    %5 = vector.load %arg3[%c0_5, %c0_6, %c0_7] : memref<1x4x128xf32, #tpu.memory_space<vmem>>, vector<1x4x128xf32>
    %6 = vector.shape_cast %5 : vector<1x4x128xf32> to vector<4x128xf32>
    %c0_8 = arith.constant 0 : index
    %c3 = arith.constant 3 : index
    %c0_9 = arith.constant 0 : index
    %7 = vector.load %arg4[%c0_8, %c3, %c0_9] : memref<1x7x128xf32, #tpu.memory_space<vmem>>, vector<1x4x128xf32>
    %8 = vector.shape_cast %7 : vector<1x4x128xf32> to vector<4x128xf32>
    %9 = vector.shape_cast %6 : vector<4x128xf32> to vector<1x4x128xf32>
    tpu.vector_store %arg4[%c0_8, %c3, %c0_9], %9 {strides = array<i32>} : memref<1x7x128xf32, #tpu.memory_space<vmem>>, vector<1x4x128xf32>,
    return
  }
  func.func @transform_0(%arg0: i32, %arg1: i32) -> (i32, i32, i32) {
    %c0_i32 = arith.constant 0 : i32
    %c0_i32_0 = arith.constant 0 : i32
    return %arg0, %c0_i32, %arg1 : i32, i32, i32
  }
  func.func @transform_1(%arg0: i32, %arg1: i32) -> (i32, i32, i32) {
    %c0_i32 = arith.constant 0 : i32
    %c0_i32_0 = arith.constant 0 : i32
    return %arg0, %c0_i32, %arg1 : i32, i32, i32
  }
  func.func @transform_2(%arg0: i32, %arg1: i32) -> (i32, i32, i32) {
    %c0_i32 = arith.constant 0 : i32
    %c0_i32_0 = arith.constant 0 : i32
    return %arg0, %c0_i32, %arg1 : i32, i32, i32
  }
}

</mosaic_0001>

<bundles_post_ra>
// kernel: tpu_custom_call.1
= control target key start
LH: loop header
LB: loop body
LE: loop exit
PB: predicated region body
PF: predicated region fallthrough
CT: control target
= control target key end

     0   :  { %s364_s9 = smov 0   ;;  %s366_s10 = smov 0   ;;  %s388_s0 = inlined_call_operand.vmem [shape: f32[2,3,128], index: 0, kind: input, shape index: {}]   ;;  %s389_s1 = inlined_call_operand.vmem [shape: f32[2,4,128], index: 1, kind: input, shape index: {}]   ;;  %s390_s2 = inlined_call_operand.vmem [shape: f32[2,7,128], index: 2, kind: output, shape index: {}]  }
   0x1   :  { %s368_s11 = smov 0  }
   0x2 LB: > { %s24_s12 = sadd.s32 1, %s343_s10  ;;  %p295_p0 = scmp.ge.s32.totalorder %s347_s11, 1  ;;  %s347_s11 = sphi %s368_s11, %s12_s11   ;;  %s343_s10 = sphi %s366_s10, %s392_s10   ;;  %s339_s9 = sphi %s364_s9, %s391_s9  }
   0x3   : > { %p26_p1 = scmp.ge.s32.totalorder %s24_s12, 2  ;;  %p144_p2 = scmp.lt.s32.totalorder %s347_s11, 3 }
   0x5   : > { %s394_s12 = smov (%p26_p1, %s24_s12), 0  ;;  %p145_p3 = pnand %p295_p0, %p144_p2 }
   0x6   : > { %p177_p4 = scmp.lt.s32.totalorder (!%p145_p3), %s339_s9, 1 }
   0x7   : > { %148 = sbr.rel (%p145_p3) target bundleno = 20 (0x14), region = 28 }
   0xe   : > { %s396_s9 = smov (!%p177_p4, %s339_s9), 1 }
   0xf   : > { %s296_s13 = sshll.u32 %s396_s9, 2  ;;  %s298_s14 = sshll.u32 %s396_s9, 3 }
  0x10   : > { %s183_s17 = scalar_lea.vmem %s388_s0, %s296_s13  ;;  %s197_s20 = scalar_lea.vmem %s390_s2, %s298_s14 }
  0x11   : > { %v198_v0 = vld [vmem:[%s183_s17] sm:$0x7]  ;;  %s190_s23 = scalar_lea.vmem %s389_s1, %s296_s13 }
  0x12   : > { %199 = vst [vmem:[%s197_s20] sm:$0x7] %v198_v0  ;;  %v200_v1 = vld [vmem:[%s190_s23] sm:$0xf] }
  0x13   : > { %201 = vst [vmem:[%s197_s20 + $0x3] sm:$0xf] %v200_v1 }
  0x14 PF: > { %s12_s11 = sadd.s32 1, %s347_s11   ;;  %s391_s9 = smov %s343_s10 }
  0x15   : > { %p9_p5 = scmp.ge.s32.totalorder %s12_s11, 4   ;;  %s392_s10 = smov %s394_s12 }
  0x17   :  { %11 = sbr.rel (!%p9_p5) target bundleno = 2 (0x2), region = 61 }

</bundles_post_ra>
